<compile_context>
chip_gen: v5e
topology: v5e:2x2
jax: 0.10.0
libtpu: 0.0.40
codegen_flags: <defaults>
</compile_context>

<pallas_src>
import jax
import jax.numpy as jnp
from jax.experimental import pallas as pl
from jax.experimental.pallas import tpu as pltpu


def _round_up(x: int, m: int) -> int:
    return -(-x // m) * m


def _choose_fold(n: int, f: int, target_rows: int = 128) -> int:
    """Largest power-of-2 k with n*k <= target_rows, k | f and f/k >= 128."""
    k = 1
    while (n * k * 2 <= target_rows
           and f % (k * 2) == 0
           and f // (k * 2) >= 128):
        k *= 2
    return k


def _row_block(n_rows: int) -> int:
    """Rows per grid block: a multiple of 8 dividing n_rows, capped at 64,
    preferring >= 2 blocks (so the 'parallel' axis can feed both v7x cores)."""
    if n_rows % 8 != 0:
        return n_rows                      # single block covering all rows
    rb = 8
    while (rb * 2 <= min(n_rows, 64)
           and n_rows % (rb * 2) == 0
           and n_rows // (rb * 2) >= 2):
        rb *= 2
    return rb


def _make_dice_kernel(rb: int, bf: int, fk: int):
    """Kernel for a (rb, bf) tile of the folded (n_rows, fk) inputs."""
    nchunks = bf // 128
    needs_mask = (fk % bf) != 0            # only the last feature tile is partial

    def kernel(p_ref, l_ref, inter_ref, union_ref):
        t = pl.program_id(1)               # feature-tile (reduction) axis

        @pl.when(t == 0)
        def _():
            inter_ref[...] = jnp.zeros_like(inter_ref)
            union_ref[...] = jnp.zeros_like(union_ref)

        inter_p = jnp.zeros((rb, 128), jnp.float32)
        union_p = jnp.zeros((rb, 128), jnp.float32)
        if needs_mask:
            lane = jax.lax.broadcasted_iota(jnp.int32, (rb, 128), 1)
            col0 = t * bf

        # Lane-chunk accumulation: pure VPU adds into (rb, 128) partials; no
        # per-tile cross-lane (XLU) reduction. Static 128-aligned ref slices
        # keep register pressure at ~4 * rb/8 vregs.
        for c in range(nchunks):
            sl = slice(c * 128, (c + 1) * 128)
            pc = jnp.round(p_ref[:, sl].astype(jnp.float32))   # hard threshold
            lc = l_ref[:, sl].astype(jnp.float32)
            if needs_mask:
                m = (lane + (col0 + c * 128)) < fk
                pc = jnp.where(m, pc, 0.0)
                lc = jnp.where(m, lc, 0.0)
            inter_p = inter_p + pc * lc
            union_p = union_p + (pc + lc)

        inter_ref[...] += inter_p
        union_ref[...] += union_p

    return kernel


@jax.jit
def dice_score(probs: jax.Array, labels: jax.Array) -> jax.Array:
    """Pallas implementation of DiceScore.forward. Returns a scalar."""
    assert probs.shape == labels.shape, (probs.shape, labels.shape)
    n = probs.shape[0]
    p2 = probs.reshape(n, -1)
    l2 = labels.reshape(n, -1)
    f = p2.shape[1]

    # Keep narrow dtypes (bf16 probs / int8 labels) — the kernel upcasts
    # in-register. bool is widened to int8 only (same HBM byte count).
    if l2.dtype == jnp.bool_:
        l2 = l2.astype(jnp.int8)

    # Fold features into sublanes so small batches fill the (8,128) vregs.
    k = _choose_fold(n, f)
    n_rows, fk = n * k, f // k
    if k > 1:
        p2 = p2.reshape(n_rows, fk)
        l2 = l2.reshape(n_rows, fk)

    rb = _row_block(n_rows)                # rows per block (divides n_rows)
    r_blocks = n_rows // rb

    # Feature tile from a generation-aware VMEM budget (v7x: 64 MiB total).
    try:
        vmem_cap = int(pltpu.get_tpu_info().vmem_capacity_bytes)
    except Exception:
        vmem_cap = 64 << 20                # conservative (v7x-sized) fallback
    buf_budget = min(vmem_cap // 4, 24 << 20)      # double-buffered input bytes
    bytes_elt = p2.dtype.itemsize + l2.dtype.itemsize
    bf = buf_budget // (2 * rb * bytes_elt)
    bf = max(128, (bf // 128) * 128)
    bf = min(bf, 8192, _round_up(fk, 128))
    t_tiles = -(-fk // bf)

    vmem_limit = int(min(vmem_cap // 2, 64 << 20))

    inter_out, union_out = pl.pallas_call(
        _make_dice_kernel(rb, bf, fk),
        out_shape=(
            jax.ShapeDtypeStruct((n_rows, 128), jnp.float32),
            jax.ShapeDtypeStruct((n_rows, 128), jnp.float32),
        ),
        grid_spec=pltpu.PrefetchScalarGridSpec(
            num_scalar_prefetch=0,
            grid=(r_blocks, t_tiles),
            in_specs=[
                pl.BlockSpec((rb, bf), lambda r, t: (r, t)),
                pl.BlockSpec((rb, bf), lambda r, t: (r, t)),
            ],
            out_specs=[
                pl.BlockSpec((rb, 128), lambda r, t: (r, 0)),
                pl.BlockSpec((rb, 128), lambda r, t: (r, 0)),
            ],
        ),
        compiler_params=pltpu.CompilerParams(
            dimension_semantics=("parallel", "arbitrary"),
            vmem_limit_bytes=vmem_limit,
        ),
    )(p2, l2)

    # Tiny JAX epilogue: fold rows back per sample, reduce lanes, dice + mean.
    inter = inter_out.reshape(n, -1).sum(axis=1)
    union = union_out.reshape(n, -1).sum(axis=1)
    dice = 2.0 * inter / jnp.maximum(union, 1e-5)  # torch.clamp(min=1e-5)
    return jnp.mean(dice)


def dice_score_ref(probs, labels):
    """Pure-JAX reference mirroring the PyTorch module."""
    p = jnp.round(probs.astype(jnp.float32))
    n = p.shape[0]
    inter = (p * labels.astype(jnp.float32)).reshape(n, -1).sum(axis=1)
    union = (p + labels.astype(jnp.float32)).reshape(n, -1).sum(axis=1)
    dice = 2.0 * inter / jnp.maximum(union, 1e-5)
    return jnp.mean(dice)


if __name__ == "__main__":
    key = jax.random.PRNGKey(0)
    k1, k2 = jax.random.split(key)
    # (N, C, H, W) = (2, 4, 16, 16), consistent with "(N, H, W, ...)"
    probs = jax.random.uniform(k1, (2, 4, 16, 16), dtype=jnp.float32)
    labels = (jax.random.uniform(k2, (2, 4, 16, 16)) > 0.5).astype(jnp.float32)

    out = dice_score(probs, labels)
    jax.block_until_ready(out)

    ref = dice_score_ref(probs, labels)
    assert jnp.allclose(out, ref, atol=1e-5, rtol=1e-5), (out, ref)
    print("KERNEL_OK")
</pallas_src>

<mosaic_0001>
module attributes {stable_mosaic.version = 11 : i64} {
  func.func @kernel(%arg0: i32, %arg1: i32, %arg2: memref<8x128xf32, #tpu.memory_space<vmem>>, %arg3: memref<8x128xf32, #tpu.memory_space<vmem>>, %arg4: memref<8x128xf32, #tpu.memory_space<vmem>>, %arg5: memref<8x128xf32, #tpu.memory_space<vmem>>) attributes {dimension_semantics = [#tpu.dimension_semantics<parallel>, #tpu.dimension_semantics<arbitrary>], iteration_bounds = array<i64: 2, 1>, scalar_prefetch = 0 : i64, scratch_operands = 0 : i64, tpu.core_type = #tpu.core_type<tc>, window_params = [{transform_indices = @transform_0, window_bounds = array<i64: 8, 128>}, {transform_indices = @transform_1, window_bounds = array<i64: 8, 128>}, {transform_indices = @transform_2, window_bounds = array<i64: 8, 128>}, {transform_indices = @transform_3, window_bounds = array<i64: 8, 128>}]} {
    %c0_i32 = arith.constant 0 : i32
    %0 = arith.cmpi eq, %arg1, %c0_i32 : i32
    %1 = arith.extui %0 : i1 to i32
    %c0_i32_0 = arith.constant 0 : i32
    %2 = arith.cmpi ne, %1, %c0_i32_0 : i32
    scf.if %2 {
      %cst_13 = arith.constant 0.000000e+00 : f32
      %18 = vector.broadcast %cst_13 : f32 to vector<8x128xf32>
      %c0_14 = arith.constant 0 : index
      %c0_15 = arith.constant 0 : index
      %19 = vector.load %arg4[%c0_14, %c0_15] : memref<8x128xf32, #tpu.memory_space<vmem>>, vector<8x128xf32>
      tpu.vector_store %arg4[%c0_14, %c0_15], %18 {strides = array<i32>} : memref<8x128xf32, #tpu.memory_space<vmem>>, vector<8x128xf32>,
      %cst_16 = arith.constant 0.000000e+00 : f32
      %20 = vector.broadcast %cst_16 : f32 to vector<8x128xf32>
      %c0_17 = arith.constant 0 : index
      %c0_18 = arith.constant 0 : index
      %21 = vector.load %arg5[%c0_17, %c0_18] : memref<8x128xf32, #tpu.memory_space<vmem>>, vector<8x128xf32>
      tpu.vector_store %arg5[%c0_17, %c0_18], %20 {strides = array<i32>} : memref<8x128xf32, #tpu.memory_space<vmem>>, vector<8x128xf32>,
    } else {
    }
    %cst = arith.constant 0.000000e+00 : f32
    %3 = vector.broadcast %cst : f32 to vector<8x128xf32>
    %cst_1 = arith.constant 0.000000e+00 : f32
    %4 = vector.broadcast %cst_1 : f32 to vector<8x128xf32>
    %c0 = arith.constant 0 : index
    %c0_2 = arith.constant 0 : index
    %5 = vector.load %arg2[%c0, %c0_2] : memref<8x128xf32, #tpu.memory_space<vmem>>, vector<8x128xf32>
    %6 = math.roundeven %5 : vector<8x128xf32>
    %c0_3 = arith.constant 0 : index
    %c0_4 = arith.constant 0 : index
    %7 = vector.load %arg3[%c0_3, %c0_4] : memref<8x128xf32, #tpu.memory_space<vmem>>, vector<8x128xf32>
    %8 = arith.mulf %6, %7 : vector<8x128xf32>
    %9 = arith.addf %3, %8 : vector<8x128xf32>
    %10 = arith.addf %6, %7 : vector<8x128xf32>
    %11 = arith.addf %4, %10 : vector<8x128xf32>
    %c0_5 = arith.constant 0 : index
    %c0_6 = arith.constant 0 : index
    %12 = vector.load %arg4[%c0_5, %c0_6] : memref<8x128xf32, #tpu.memory_space<vmem>>, vector<8x128xf32>
    %13 = arith.addf %12, %9 : vector<8x128xf32>
    %c0_7 = arith.constant 0 : index
    %c0_8 = arith.constant 0 : index
    %14 = vector.load %arg4[%c0_7, %c0_8] : memref<8x128xf32, #tpu.memory_space<vmem>>, vector<8x128xf32>
    tpu.vector_store %arg4[%c0_7, %c0_8], %13 {strides = array<i32>} : memref<8x128xf32, #tpu.memory_space<vmem>>, vector<8x128xf32>,
    %c0_9 = arith.constant 0 : index
    %c0_10 = arith.constant 0 : index
    %15 = vector.load %arg5[%c0_9, %c0_10] : memref<8x128xf32, #tpu.memory_space<vmem>>, vector<8x128xf32>
    %16 = arith.addf %15, %11 : vector<8x128xf32>
    %c0_11 = arith.constant 0 : index
    %c0_12 = arith.constant 0 : index
    %17 = vector.load %arg5[%c0_11, %c0_12] : memref<8x128xf32, #tpu.memory_space<vmem>>, vector<8x128xf32>
    tpu.vector_store %arg5[%c0_11, %c0_12], %16 {strides = array<i32>} : memref<8x128xf32, #tpu.memory_space<vmem>>, vector<8x128xf32>,
    return
  }
  func.func @transform_0(%arg0: i32, %arg1: i32) -> (i32, i32) {
    %c0_i32 = arith.constant 0 : i32
    return %arg0, %arg1 : i32, i32
  }
  func.func @transform_1(%arg0: i32, %arg1: i32) -> (i32, i32) {
    %c0_i32 = arith.constant 0 : i32
    return %arg0, %arg1 : i32, i32
  }
  func.func @transform_2(%arg0: i32, %arg1: i32) -> (i32, i32) {
    %c0_i32 = arith.constant 0 : i32
    %c0_i32_0 = arith.constant 0 : i32
    return %arg0, %c0_i32 : i32, i32
  }
  func.func @transform_3(%arg0: i32, %arg1: i32) -> (i32, i32) {
    %c0_i32 = arith.constant 0 : i32
    %c0_i32_0 = arith.constant 0 : i32
    return %arg0, %c0_i32 : i32, i32
  }
}

</mosaic_0001>

<bundles_post_ra>
// kernel: dice_score.1
= control target key start
LH: loop header
LB: loop body
LE: loop exit
PB: predicated region body
PF: predicated region fallthrough
CT: control target
= control target key end

     0   :  { %s445_s12 = smov 0   ;;  %s447_s13 = smov 0   ;;  %s481_s0 = inlined_call_operand.vmem [shape: f32[16,128], index: 0, kind: input, shape index: {}]   ;;  %s482_s1 = inlined_call_operand.vmem [shape: f32[16,128], index: 1, kind: input, shape index: {}]   ;;  %s483_s2 = inlined_call_operand.vmem [shape: f32[16,128], index: 2, kind: output, shape index: {0}]   ;;  %s484_s3 = inlined_call_operand.vmem [shape: f32[16,128], index: 3, kind: output, shape index: {1}]  }
   0x1   :  { %s449_s14 = smov 0  }
   0x2 LB: > { %s26_s15 = sadd.s32 1, %s419_s13  ;;  %p361_p0 = scmp.ge.s32.totalorder %s423_s14, 1  ;;  %s423_s14 = sphi %s449_s14, %s14_s14   ;;  %s419_s13 = sphi %s447_s13, %s486_s13   ;;  %s415_s12 = sphi %s445_s12, %s485_s12  }
   0x3   : > { %p28_p1 = scmp.ge.s32.totalorder %s26_s15, 2  ;;  %p170_p2 = scmp.lt.s32.totalorder %s423_s14, 3 }
   0x5   : > { %s488_s15 = smov (%p28_p1, %s26_s15), 0  ;;  %p171_p3 = pnand %p361_p0, %p170_p2 }
   0x6   : > { %p206_p4 = scmp.lt.s32.totalorder (!%p171_p3), %s415_s12, 1 }
   0x7   : > { %174 = sbr.rel (%p171_p3) target bundleno = 29 (0x1d), region = 28 }
   0xc   : > { %s490_s12 = smov (!%p206_p4, %s415_s12), 1 }
   0xd   : > { %s362_s16 = sshll.u32 %s490_s12, 3 }
   0xe   : > { %s212_s19 = scalar_lea.vmem %s481_s0, %s362_s16  ;;  %s219_s22 = scalar_lea.vmem %s482_s1, %s362_s16 }
   0xf   : > { %v234_v0 = vld [vmem:[%s212_s19] sm:$0xff]  ;;  %s223_s25 = scalar_lea.vmem %s483_s2, %s362_s16  ;;  %s227_s28 = scalar_lea.vmem %s484_s3, %s362_s16 }
  0x10   : > { %v370_v1 = vcvt.f32.s32 %v234_v0  ;;  %v368_v2 = vand.u32 2147483647, %v234_v0  ;;  %v373_v4 = vand.u32 2147483648, %v234_v0  ;;  %v236_v7 = vld [vmem:[%s219_s22] sm:$0xff] }
  0x12   : > { %v371_v3 = vcvt.s32.f32 %v370_v1  ;;  %vm369_vm0 = vcmp.lt.f32.partialorder %v368_v2, 8388608.0 }
  0x14   : > { %v372_v5 = vand.u32 2147483647, %v371_v3 }
  0x16   : > { %v374_v6 = vor.u32 %v373_v4, %v372_v5 }
  0x18   : > { %v375_v8 = vsel %vm369_vm0, %v374_v6, %v234_v0 }
  0x19   : > { %v237_v9 = vmul.f32 %v375_v8, %v236_v7  ;;  %v239_v10 = vadd.f32 %v375_v8, %v236_v7 }
  0x1b   : > { %243 = vst [vmem:[%s223_s25] sm:$0xff] %v237_v9 }
  0x1c   : > { %246 = vst [vmem:[%s227_s28] sm:$0xff] %v239_v10 }
  0x1d PF: > { %s14_s14 = sadd.s32 1, %s423_s14   ;;  %s485_s12 = smov %s419_s13 }
  0x1e   : > { %p11_p5 = scmp.ge.s32.totalorder %s14_s14, 4   ;;  %s486_s13 = smov %s488_s15 }
  0x20   :  { %13 = sbr.rel (!%p11_p5) target bundleno = 2 (0x2), region = 77 }

</bundles_post_ra>
